<compile_context>
chip_gen: v7x
topology: tpu7x:2x2x1
jax: 0.10.0
libtpu: 0.0.40
codegen_flags: <defaults>
</compile_context>

<pallas_src>
import jax
import jax.numpy as jnp
from jax.experimental import pallas as pl
from jax.experimental.pallas import tpu as pltpu


def _round_up(x, m):
    return (x + m - 1) // m * m


def _choose_row_tile(M, L, desired):
    """Pick the per-step row tile (in packed rows)."""
    # VMEM cost per pipelined input buffer uses the lane-PADDED width.
    lane_w = max(_round_up(L, 128), 128)
    vmem_budget = 16 * 1024 * 1024                       # inputs, double-buffered
    vmem_cap = max(8, vmem_budget // (2 * 2 * lane_w * 4))  # 2 inputs x 2 buffers x 4B
    tm = min(desired, vmem_cap)
    if M <= 8:
        return M                                          # single full block is legal
    # Keep >= 2 grid steps so both v7x TensorCores receive work.
    tm = min(tm, _round_up(pl.cdiv(M, 2), 8))
    tm = max(8, (tm // 8) * 8)                            # sublane-aligned
    return tm


def _make_kernel(E, R):
    def kernel(scal_ref, pos_ref, neg_ref, w1p_ref, w1n_ref, b1_ref, w2_ref, out_ref):
        # pos/neg: [TM, L]; w1p/w1n: [L, L]; b1: [1, L]
        # w2: [1, E] (R == 1, VPU path) or [L, R] (packed, block-diagonal)
        alpha = scal_ref[0]
        b2 = scal_ref[1]
        h = jnp.dot(pos_ref[...], w1p_ref[...], preferred_element_type=jnp.float32)
        h = h + jnp.dot(neg_ref[...], w1n_ref[...], preferred_element_type=jnp.float32)
        h = h + b1_ref[...]
        h = jnp.where(h > 0.0, h, alpha * h)              # PReLU, single shared alpha
        if R == 1:
            # VPU multiply + lane reduce instead of a width-1 MXU matmul.
            o = jnp.sum(h * w2_ref[...], axis=-1, keepdims=True)
        else:
            # Block-diagonal (L, R) second linear on the (mostly idle) MXU.
            o = jnp.dot(h, w2_ref[...], preferred_element_type=jnp.float32)
        out_ref[...] = jax.nn.sigmoid(o + b2).astype(out_ref.dtype)
    return kernel


def auxiliary_net(pos_embd, neg_embd, params, *, row_tile=8192):
    """pos_embd, neg_embd: [B, T, E] float32 -> returns [B, T, 1] float32."""
    w1, b1, alpha, w2, b2 = (params["w1"], params["b1"], params["alpha"],
                             params["w2"], params["b2"])
    B, T, E = pos_embd.shape
    N = B * T

    pos = pos_embd.reshape(N, E)                          # free (contiguous)
    neg = neg_embd.reshape(N, E)

    # Split W1 (stored transposed, (2E, E)) into pos / neg halves: the [N, 2E]
    # concat never exists.
    w1p, w1n = w1[:E], w1[E:]

    # Lane packing factor: fold R = 128/E original rows into the 128-lane axis
    # when that is a free reshape.
    R = 1
    if E < 128 and 128 % E == 0 and N % (128 // E) == 0:
        R = 128 // E
    L = E * R

    if R > 1:
        M = N // R
        pos = pos.reshape(M, L)                           # free (contiguous)
        neg = neg.reshape(M, L)
        eye = jnp.eye(R, dtype=w1p.dtype)
        w1p_k = jnp.kron(eye, w1p)                        # (L, L) block-diagonal
        w1n_k = jnp.kron(eye, w1n)
        b1_k = jnp.tile(b1, (1, R))                       # (1, L)
        w2_k = jnp.kron(eye, w2)                          # (L, R) block-diagonal cols
    else:
        M = N
        w1p_k, w1n_k = w1p, w1n
        b1_k = b1
        w2_k = w2.reshape(1, E)                           # row vector for VPU path

    TM = _choose_row_tile(M, L, max(1, row_tile // R))
    grid = (pl.cdiv(M, TM),)                              # partial last block is masked

    # Scalars (PReLU alpha, output bias) live in SMEM.
    scal = jnp.concatenate([alpha.reshape(-1), b2.reshape(-1)]).astype(jnp.float32)

    out = pl.pallas_call(
        _make_kernel(E, R),
        out_shape=jax.ShapeDtypeStruct((M, R), jnp.float32),
        grid=grid,
        in_specs=[
            pl.BlockSpec(memory_space=pltpu.MemorySpace.SMEM),   # [alpha, b2]
            pl.BlockSpec((TM, L), lambda i: (i, 0)),             # pos rows
            pl.BlockSpec((TM, L), lambda i: (i, 0)),             # neg rows
            pl.BlockSpec((L, L), lambda i: (0, 0)),              # W1 pos half (resident)
            pl.BlockSpec((L, L), lambda i: (0, 0)),              # W1 neg half (resident)
            pl.BlockSpec((1, L), lambda i: (0, 0)),              # b1 (resident)
            pl.BlockSpec(w2_k.shape, lambda i: (0, 0)),          # W2 (resident)
        ],
        out_specs=pl.BlockSpec((TM, R), lambda i: (i, 0)),
        compiler_params=pltpu.CompilerParams(
            dimension_semantics=("parallel",)),
    )(scal, pos, neg, w1p_k, w1n_k, b1_k, w2_k)

    # (M, R) row-major == original row order; reshape is free.
    return out.reshape(B, T, 1)


def init_params(embd_dim, key):
    """Deterministic synthetic init matching nn.Linear / nn.PReLU shapes."""
    k1, k2, k3, k4 = jax.random.split(key, 4)
    E = embd_dim
    # nn.Linear(2E, E): weight (E, 2E), bias (E,)  -> stored transposed (2E, E)
    lim1 = 1.0 / (2 * E) ** 0.5
    w1 = jax.random.uniform(k1, (2 * E, E), jnp.float32, -lim1, lim1)
    b1 = jax.random.uniform(k2, (1, E), jnp.float32, -lim1, lim1)
    # nn.PReLU(): single parameter, init 0.25
    alpha = jnp.array([0.25], dtype=jnp.float32)
    # nn.Linear(E, 1): weight (1, E), bias (1,)    -> stored transposed (E, 1)
    lim2 = 1.0 / E ** 0.5
    w2 = jax.random.uniform(k3, (E, 1), jnp.float32, -lim2, lim2)
    b2 = jax.random.uniform(k4, (1, 1), jnp.float32, -lim2, lim2)
    return {"w1": w1, "b1": b1, "alpha": alpha, "w2": w2, "b2": b2}


def auxiliary_net_ref(pos_embd, neg_embd, params):
    """Pure-JAX reference (mirrors the PyTorch forward)."""
    x = jnp.concatenate([pos_embd, neg_embd], axis=-1)
    h = x @ params["w1"] + params["b1"][0]
    a = params["alpha"][0]
    h = jnp.where(h > 0, h, a * h)
    o = h @ params["w2"] + params["b2"][0]
    return jax.nn.sigmoid(o)


if __name__ == "__main__":
    key = jax.random.PRNGKey(0)
    k_p, k_n, k_w, k_p2, k_n2, k_p3, k_n3 = jax.random.split(key, 7)

    # 1) Small canonical shape: N % (128/E) == 0 -> lane-packed path, single step.
    B, T, E = 2, 8, 32
    pos_embd = jax.random.normal(k_p, (B, T, E), jnp.float32)
    neg_embd = jax.random.normal(k_n, (B, T, E), jnp.float32)
    params = init_params(E, k_w)

    out = jax.block_until_ready(auxiliary_net(pos_embd, neg_embd, params))
    ref = auxiliary_net_ref(pos_embd, neg_embd, params)
    assert out.shape == (B, T, 1), out.shape
    assert jnp.allclose(out, ref, atol=1e-5, rtol=1e-5), (
        float(jnp.max(jnp.abs(out - ref))))

    # 2) N not a multiple of 128/E -> unpacked fallback, multi-step grid with a
    #    masked partial last block (no padding copies anywhere).
    B2, T2 = 3, 37
    pos2 = jax.random.normal(k_p2, (B2, T2, E), jnp.float32)
    neg2 = jax.random.normal(k_n2, (B2, T2, E), jnp.float32)
    out2 = jax.block_until_ready(auxiliary_net(pos2, neg2, params, row_tile=64))
    ref2 = auxiliary_net_ref(pos2, neg2, params)
    assert out2.shape == (B2, T2, 1), out2.shape
    assert jnp.allclose(out2, ref2, atol=1e-5, rtol=1e-5), (
        float(jnp.max(jnp.abs(out2 - ref2))))

    # 3) Lane-packed path with a multi-step grid and a masked partial last block.
    B3, T3 = 4, 100
    pos3 = jax.random.normal(k_p3, (B3, T3, E), jnp.float32)
    neg3 = jax.random.normal(k_n3, (B3, T3, E), jnp.float32)
    out3 = jax.block_until_ready(auxiliary_net(pos3, neg3, params))
    ref3 = auxiliary_net_ref(pos3, neg3, params)
    assert out3.shape == (B3, T3, 1), out3.shape
    assert jnp.allclose(out3, ref3, atol=1e-5, rtol=1e-5), (
        float(jnp.max(jnp.abs(out3 - ref3))))

    print("KERNEL_OK")
</pallas_src>

<mosaic_0001>
module attributes {stable_mosaic.version = 11 : i64} {
  func.func @kernel(%arg0: i32, %arg1: memref<2xf32, #tpu.memory_space<smem>>, %arg2: memref<4x128xf32, #tpu.memory_space<vmem>>, %arg3: memref<4x128xf32, #tpu.memory_space<vmem>>, %arg4: memref<128x128xf32, #tpu.memory_space<vmem>>, %arg5: memref<128x128xf32, #tpu.memory_space<vmem>>, %arg6: memref<1x128xf32, #tpu.memory_space<vmem>>, %arg7: memref<128x4xf32, #tpu.memory_space<vmem>>, %arg8: memref<4x4xf32, #tpu.memory_space<vmem>>) attributes {dimension_semantics = [#tpu.dimension_semantics<parallel>], iteration_bounds = array<i64: 1>, scalar_prefetch = 0 : i64, scratch_operands = 0 : i64, tpu.core_type = #tpu.core_type<tc>, window_params = [{transform_indices = @transform_0, window_bounds = array<i64: 2>}, {transform_indices = @transform_1, window_bounds = array<i64: 4, 128>}, {transform_indices = @transform_2, window_bounds = array<i64: 4, 128>}, {pipeline_mode = #tpu.pipeline_mode<synchronous>, transform_indices = @transform_3, window_bounds = array<i64: 128, 128>}, {pipeline_mode = #tpu.pipeline_mode<synchronous>, transform_indices = @transform_4, window_bounds = array<i64: 128, 128>}, {pipeline_mode = #tpu.pipeline_mode<synchronous>, transform_indices = @transform_5, window_bounds = array<i64: 1, 128>}, {pipeline_mode = #tpu.pipeline_mode<synchronous>, transform_indices = @transform_6, window_bounds = array<i64: 128, 4>}, {transform_indices = @transform_7, window_bounds = array<i64: 4, 4>}]} {
    %c0 = arith.constant 0 : index
    %0 = memref.load %arg1[%c0] : memref<2xf32, #tpu.memory_space<smem>>
    %c1 = arith.constant 1 : index
    %1 = memref.load %arg1[%c1] : memref<2xf32, #tpu.memory_space<smem>>
    %c0_0 = arith.constant 0 : index
    %c0_1 = arith.constant 0 : index
    %2 = vector.load %arg2[%c0_0, %c0_1] : memref<4x128xf32, #tpu.memory_space<vmem>>, vector<4x128xf32>
    %c0_2 = arith.constant 0 : index
    %c0_3 = arith.constant 0 : index
    %3 = vector.load %arg4[%c0_2, %c0_3] : memref<128x128xf32, #tpu.memory_space<vmem>>, vector<128x128xf32>
    %cst = arith.constant dense<0.000000e+00> : vector<4x128xf32>
    %4 = tpu.matmul %2, %3, %cst {dimension_numbers = #tpu.dot_dimension_numbers<[1], [0], [0], [1], [0, 0, 1, 1], [], []>} : vector<4x128xf32>, vector<128x128xf32>, vector<4x128xf32> -> vector<4x128xf32>
    %c0_4 = arith.constant 0 : index
    %c0_5 = arith.constant 0 : index
    %5 = vector.load %arg3[%c0_4, %c0_5] : memref<4x128xf32, #tpu.memory_space<vmem>>, vector<4x128xf32>
    %c0_6 = arith.constant 0 : index
    %c0_7 = arith.constant 0 : index
    %6 = vector.load %arg5[%c0_6, %c0_7] : memref<128x128xf32, #tpu.memory_space<vmem>>, vector<128x128xf32>
    %cst_8 = arith.constant dense<0.000000e+00> : vector<4x128xf32>
    %7 = tpu.matmul %5, %6, %cst_8 {dimension_numbers = #tpu.dot_dimension_numbers<[1], [0], [0], [1], [0, 0, 1, 1], [], []>} : vector<4x128xf32>, vector<128x128xf32>, vector<4x128xf32> -> vector<4x128xf32>
    %8 = arith.addf %4, %7 : vector<4x128xf32>
    %c0_9 = arith.constant 0 : index
    %c0_10 = arith.constant 0 : index
    %9 = vector.load %arg6[%c0_9, %c0_10] : memref<1x128xf32, #tpu.memory_space<vmem>>, vector<1x128xf32>
    %10 = vector.broadcast %9 : vector<1x128xf32> to vector<4x128xf32>
    %11 = arith.addf %8, %10 : vector<4x128xf32>
    %cst_11 = arith.constant 0.000000e+00 : f32
    %12 = vector.broadcast %cst_11 : f32 to vector<4x128xf32>
    %13 = arith.cmpf ogt, %11, %12 : vector<4x128xf32>
    %14 = vector.broadcast %0 : f32 to vector<4x128xf32>
    %15 = arith.mulf %14, %11 : vector<4x128xf32>
    %16 = arith.select %13, %11, %15 : vector<4x128xi1>, vector<4x128xf32>
    %c0_12 = arith.constant 0 : index
    %c0_13 = arith.constant 0 : index
    %17 = vector.load %arg7[%c0_12, %c0_13] : memref<128x4xf32, #tpu.memory_space<vmem>>, vector<128x4xf32>
    %cst_14 = arith.constant dense<0.000000e+00> : vector<4x4xf32>
    %18 = tpu.matmul %16, %17, %cst_14 {dimension_numbers = #tpu.dot_dimension_numbers<[1], [0], [0], [1], [0, 0, 1, 1], [], []>} : vector<4x128xf32>, vector<128x4xf32>, vector<4x4xf32> -> vector<4x4xf32>
    %19 = vector.broadcast %1 : f32 to vector<4x4xf32>
    %20 = arith.addf %18, %19 : vector<4x4xf32>
    %21 = arith.negf %20 : vector<4x4xf32>
    %22 = math.exp %21 : vector<4x4xf32>
    %cst_15 = arith.constant 1.000000e+00 : f32
    %23 = vector.broadcast %cst_15 : f32 to vector<4x4xf32>
    %24 = arith.addf %23, %22 : vector<4x4xf32>
    %25 = arith.divf %23, %24 : vector<4x4xf32>
    %c0_16 = arith.constant 0 : index
    %c0_17 = arith.constant 0 : index
    %26 = vector.load %arg8[%c0_16, %c0_17] : memref<4x4xf32, #tpu.memory_space<vmem>>, vector<4x4xf32>
    tpu.vector_store %arg8[%c0_16, %c0_17], %25 {strides = array<i32>} : memref<4x4xf32, #tpu.memory_space<vmem>>, vector<4x4xf32>,
    return
  }
  func.func @transform_0(%arg0: i32) -> i32 {
    %c0_i32 = arith.constant 0 : i32
    %c0_i32_0 = arith.constant 0 : i32
    return %c0_i32 : i32
  }
  func.func @transform_1(%arg0: i32) -> (i32, i32) {
    %c0_i32 = arith.constant 0 : i32
    %c0_i32_0 = arith.constant 0 : i32
    return %arg0, %c0_i32 : i32, i32
  }
  func.func @transform_2(%arg0: i32) -> (i32, i32) {
    %c0_i32 = arith.constant 0 : i32
    %c0_i32_0 = arith.constant 0 : i32
    return %arg0, %c0_i32 : i32, i32
  }
  func.func @transform_3(%arg0: i32) -> (i32, i32) {
    %c0_i32 = arith.constant 0 : i32
    %c0_i32_0 = arith.constant 0 : i32
    %c0_i32_1 = arith.constant 0 : i32
    return %c0_i32, %c0_i32_0 : i32, i32
  }
  func.func @transform_4(%arg0: i32) -> (i32, i32) {
    %c0_i32 = arith.constant 0 : i32
    %c0_i32_0 = arith.constant 0 : i32
    %c0_i32_1 = arith.constant 0 : i32
    return %c0_i32, %c0_i32_0 : i32, i32
  }
  func.func @transform_5(%arg0: i32) -> (i32, i32) {
    %c0_i32 = arith.constant 0 : i32
    %c0_i32_0 = arith.constant 0 : i32
    %c0_i32_1 = arith.constant 0 : i32
    return %c0_i32, %c0_i32_0 : i32, i32
  }
  func.func @transform_6(%arg0: i32) -> (i32, i32) {
    %c0_i32 = arith.constant 0 : i32
    %c0_i32_0 = arith.constant 0 : i32
    %c0_i32_1 = arith.constant 0 : i32
    return %c0_i32, %c0_i32_0 : i32, i32
  }
  func.func @transform_7(%arg0: i32) -> (i32, i32) {
    %c0_i32 = arith.constant 0 : i32
    %c0_i32_0 = arith.constant 0 : i32
    return %arg0, %c0_i32 : i32, i32
  }
}

</mosaic_0001>

<bundles_post_ra>
// kernel: tpu_custom_call.1
= control target key start
LH: loop header
LB: loop body
LE: loop exit
PB: predicated region body
PF: predicated region fallthrough
CT: control target
= control target key end

     0   :  { %12 = vsyncpa [#allocation5], 0  ;;  %s868_s0 = inlined_call_operand.vmem [shape: f32[2], index: 0, kind: input, shape index: {}]   ;;  %s869_s1 = inlined_call_operand.vmem [shape: f32[4,128], index: 1, kind: input, shape index: {}]   ;;  %s870_s2 = inlined_call_operand.vmem [shape: f32[4,128], index: 2, kind: input, shape index: {}]   ;;  %s871_s3 = inlined_call_operand.vmem [shape: f32[128,128], index: 3, kind: input, shape index: {}]   ;;  %s872_s4 = inlined_call_operand.hbm [shape: f32[128,128], index: 4, kind: input, shape index: {}]   ;;  %s873_s5 = inlined_call_operand.vmem [shape: f32[1,128], index: 5, kind: input, shape index: {}]   ;;  %s874_s6 = inlined_call_operand.vmem [shape: f32[128,4], index: 6, kind: input, shape index: {}]   ;;  %s875_s7 = inlined_call_operand.hbm [shape: f32[4,4], index: 7, kind: output, shape index: {}]  }
   0x1   :  { %13 = vsyncpa [#allocation3], 0 }
   0x2   :  { %14 = vsyncpa [#allocation4], 0  ;;  %s21_s26 = sshll.u32 %s868_s0, 4  ;;  %s22_s26 = int_to_ptr.vmem [resolvable:$true] %s21_s26 }
   0x3   :  { %s596_s27 = scalar_lea.vmem %s22_s26, 16  ;;  %p601_p1 = scmp.lt.s32.totalorder %s22_s26, %s22_s26 }
   0x4   :  { %p597_p0 = scmp.ne.s32.totalorder %s22_s26, %s596_s27  ;;  %p602_p2 = scmp.lt.s32.totalorder %s596_s27, %s596_s27 }
   0x6   :  { %p603_p3 = por %p602_p2, %p601_p1 }
   0x8   :  { %p604_p4 = pnand %p603_p3, %p597_p0 }
   0xa   :  { %607 = shalt.err (!%p604_p4)
}
   0xb   :  { %s658_s28 = smov [#allocation2]   ;;  %s659_s29 = smov [#allocation6]  }
   0xc   :  { %24 = dma.vmem_to_smem %s22_s26, 16, %s658_s28, [#allocation5]  }
   0xd   :  { %s36_s30 = sshll.u32 %s659_s29, 4  ;;  %s608_s10 = scalar_lea.hbm %s872_s4, 2048  ;;  %s37_s30 = int_to_ptr.vmem [resolvable:$true] %s36_s30 }
   0xe   :  { %p609_p5 = scmp.ne.s32.totalorder %s872_s4, %s608_s10  ;;  %p612_p6 = scmp.lt.u32.totalorder %s608_s10, %s872_s4 }
  0x10   :  { %p614_p7 = pnand %p612_p6, %p609_p5 }
  0x12   :  { %617 = shalt.err (!%p614_p7)
}
  0x13   :  { %s618_s14 = scalar_lea.vmem %s37_s30, 2048  ;;  %p623_p9 = scmp.lt.s32.totalorder %s37_s30, %s37_s30 }
  0x14   :  { %p619_p8 = scmp.ne.s32.totalorder %s37_s30, %s618_s14  ;;  %p624_p10 = scmp.lt.s32.totalorder %s618_s14, %s618_s14 }
  0x16   :  { %p625_p11 = por %p624_p10, %p623_p9 }
  0x18   :  { %p626_p12 = pnand %p625_p11, %p619_p8 }
  0x1a   :  { %629 = shalt.err (!%p626_p12)
}
  0x1b   :  { %s660_s15 = smov 128   ;;  %s661_s16 = smov 8  }
  0x1c   :  { %42 = dma.hbm_to_vmem [thread:$0]  %s872_s4, 2048, %s37_s30, [#allocation3], %s660_s15, %s660_s15, %s661_s16  }
  0x1d   :  { %652 = dma.done.wait [#allocation5], 16  }
  0x1e   :  { %653 = vsyncadd [#allocation5], 4294967280 }
  0x1f   :  { %654 = dma.done.wait [#allocation3], 2048  }
  0x20   :  { %655 = vsyncadd [#allocation3], 4294965248 }
  0x21   :  { %53 = sfence }
  0x22   :  { %v74_v0 = vld [vmem:[#allocation6] sm:$0xff]  ;;  %v75_v1 = vld [vmem:[#allocation6 + $0x8] sm:$0xff]  ;;  %v662_v3 = vmov 0.0|0.0   ;;  %v76_v6 = vld [vmem:[#allocation6 + $0x10] sm:$0xff]  ;;  %vm663_vm0 = vmmov 0   ;;  %v664_v11 = vmov 0.0  }
  0x23   :  { %v57_v2 = vld [vmem:[%s871_s3] sm:$0xff]  ;;  %512 = vmatprep.subr.bf16.mxu0 %v662_v3  ;;  %536 = vmatprep.subr.bf16.mxu1 %v662_v3  ;;  %v513_v4 = vpack.c.bf16 %v75_v1, %v74_v0  ;;  %v58_v5 = vld [vmem:[%s871_s3 + $0x8] sm:$0xff]  ;;  %v77_v7 = vld [vmem:[#allocation6 + $0x18] sm:$0xff]  ;;  %s54_s9 = sld [smem:[#allocation2]]  ;;  %s353_s12 = sld [smem:[#allocation2 + $0x1]]  ;;  %vm335_vm2 = vcmask 27648  }
  0x24   :  { %v537_v8 = vpack.c.bf16 %v58_v5, %v57_v2  ;;  %v59_v9 = vld [vmem:[%s871_s3 + $0x10] sm:$0xff]  ;;  %v60_v10 = vld [vmem:[%s871_s3 + $0x18] sm:$0xff]  ;;  %439 = vmatprep.mubr.msk.f32.mxu0 %vm663_vm0, %v664_v11  ;;  %474 = vmatprep.mubr.msk.f32.mxu1 %vm663_vm0, %v664_v11  ;;  %v516_v12 = vpack.c.bf16 %v77_v7, %v76_v6  ;;  %v78_v14 = vld [vmem:[#allocation6 + $0x20] sm:$0xff] }
  0x25   :  { %514 = vmatpush3.bf16.msra.mxu0 %v513_v4  ;;  %v540_v13 = vpack.c.bf16 %v60_v10, %v59_v9  ;;  %v79_v15 = vld [vmem:[#allocation6 + $0x28] sm:$0xff]  ;;  %v61_v16 = vld [vmem:[%s871_s3 + $0x20] sm:$0xff]  ;;  %v80_v20 = vld [vmem:[#allocation6 + $0x30] sm:$0xff] }
  0x26   :  { %538 = vmatpush3.bf16.msra.mxu1 %v537_v8  ;;  %515 = vmatprep.subr.bf16.mxu0 %v662_v3  ;;  %v62_v17 = vld [vmem:[%s871_s3 + $0x28] sm:$0xff]  ;;  %v519_v18 = vpack.c.bf16 %v79_v15, %v78_v14  ;;  %v81_v21 = vld [vmem:[#allocation6 + $0x38] sm:$0xff]  ;;  %v63_v22 = vld [vmem:[%s871_s3 + $0x30] sm:$0xff] }
  0x27   :  { %539 = vmatprep.subr.bf16.mxu1 %v662_v3  ;;  %v543_v19 = vpack.c.bf16 %v62_v17, %v61_v16  ;;  %v64_v23 = vld [vmem:[%s871_s3 + $0x38] sm:$0xff]  ;;  %v522_v24 = vpack.c.bf16 %v81_v21, %v80_v20  ;;  %v82_v26 = vld [vmem:[#allocation6 + $0x40] sm:$0xff]  ;;  %v83_v27 = vld [vmem:[#allocation6 + $0x48] sm:$0xff] }
  0x28   :  { %v546_v25 = vpack.c.bf16 %v64_v23, %v63_v22  ;;  %v65_v28 = vld [vmem:[%s871_s3 + $0x40] sm:$0xff]  ;;  %v66_v29 = vld [vmem:[%s871_s3 + $0x48] sm:$0xff]  ;;  %v525_v30 = vpack.c.bf16 %v83_v27, %v82_v26  ;;  %v84_v32 = vld [vmem:[#allocation6 + $0x50] sm:$0xff] }
  0x29   :  { %517 = vmatpush3.bf16.msra.mxu0 %v516_v12  ;;  %v549_v31 = vpack.c.bf16 %v66_v29, %v65_v28  ;;  %v85_v33 = vld [vmem:[#allocation6 + $0x58] sm:$0xff]  ;;  %v67_v34 = vld [vmem:[%s871_s3 + $0x50] sm:$0xff]  ;;  %v86_v38 = vld [vmem:[#allocation6 + $0x60] sm:$0xff]  ;;  %v258_v22 = vstv %s353_s12 }
  0x2a   :  { %541 = vmatpush3.bf16.msra.mxu1 %v540_v13  ;;  %518 = vmatprep.subr.bf16.mxu0 %v662_v3  ;;  %v68_v35 = vld [vmem:[%s871_s3 + $0x58] sm:$0xff]  ;;  %v528_v36 = vpack.c.bf16 %v85_v33, %v84_v32  ;;  %v87_v39 = vld [vmem:[#allocation6 + $0x68] sm:$0xff]  ;;  %v69_v40 = vld [vmem:[%s871_s3 + $0x60] sm:$0xff] }
  0x2b   :  { %542 = vmatprep.subr.bf16.mxu1 %v662_v3  ;;  %v552_v37 = vpack.c.bf16 %v68_v35, %v67_v34  ;;  %v70_v41 = vld [vmem:[%s871_s3 + $0x68] sm:$0xff]  ;;  %v531_v42 = vpack.c.bf16 %v87_v39, %v86_v38  ;;  %v88_v44 = vld [vmem:[#allocation6 + $0x70] sm:$0xff]  ;;  %v89_v45 = vld [vmem:[#allocation6 + $0x78] sm:$0xff] }
  0x2c   :  { %v555_v43 = vpack.c.bf16 %v70_v41, %v69_v40  ;;  %v71_v46 = vld [vmem:[%s871_s3 + $0x70] sm:$0xff]  ;;  %v72_v47 = vld [vmem:[%s871_s3 + $0x78] sm:$0xff]  ;;  %v534_v48 = vpack.c.bf16 %v89_v45, %v88_v44  ;;  %v242_v50 = vld [vmem:[%s874_s6] sm:$0xff] }
  0x2d   :  { %520 = vmatpush3.bf16.msra.mxu0 %v519_v18  ;;  %v558_v49 = vpack.c.bf16 %v72_v47, %v71_v46  ;;  %v243_v51 = vld [vmem:[%s874_s6 + $0x8] sm:$0xff]  ;;  %v73_v52 = vld [vmem:[%s870_s2] sm:$0xf]  ;;  %v244_v55 = vld [vmem:[%s874_s6 + $0x10] sm:$0xff]  ;;  %v239_v18 = vstv %s54_s9 }
  0x2e   :  { %544 = vmatpush3.bf16.msra.mxu1 %v543_v19  ;;  %521 = vmatprep.subr.bf16.mxu0 %v662_v3  ;;  %v561_v53 = vpack.c.bf16 %v243_v51, %v242_v50  ;;  %v56_v54 = vld [vmem:[%s869_s1] sm:$0xf]  ;;  %v245_v56 = vld [vmem:[%s874_s6 + $0x18] sm:$0xff]  ;;  %v247_v59 = vld [vmem:[%s874_s6 + $0x28] sm:$0xff] }
  0x2f   :  { %545 = vmatprep.subr.bf16.mxu1 %v662_v3  ;;  %v564_v57 = vpack.c.bf16 %v245_v56, %v244_v55  ;;  %v246_v58 = vld [vmem:[%s874_s6 + $0x20] sm:$0xff]  ;;  %v248_v61 = vld [vmem:[%s874_s6 + $0x30] sm:$0xff]  ;;  %v249_v62 = vld [vmem:[%s874_s6 + $0x38] sm:$0xff] }
  0x30   :  { %v567_v60 = vpack.c.bf16 %v247_v59, %v246_v58  ;;  %v570_v63 = vpack.c.bf16 %v249_v62, %v248_v61  ;;  %v250_v0 = vld [vmem:[%s874_s6 + $0x40] sm:$0xff]  ;;  %v251_v1 = vld [vmem:[%s874_s6 + $0x48] sm:$0xff]  ;;  %v252_v4 = vld [vmem:[%s874_s6 + $0x50] sm:$0xff] }
  0x31   :  { %523 = vmatpush3.bf16.msra.mxu0 %v522_v24  ;;  %v573_v2 = vpack.c.bf16 %v251_v1, %v250_v0  ;;  %v253_v5 = vld [vmem:[%s874_s6 + $0x58] sm:$0xff]  ;;  %v254_v7 = vld [vmem:[%s874_s6 + $0x60] sm:$0xff]  ;;  %v255_v8 = vld [vmem:[%s874_s6 + $0x68] sm:$0xff] }
  0x32   :  { %547 = vmatpush3.bf16.msra.mxu1 %v546_v25  ;;  %524 = vmatprep.subr.bf16.mxu0 %v662_v3  ;;  %v576_v6 = vpack.c.bf16 %v253_v5, %v252_v4  ;;  %v579_v9 = vpack.c.bf16 %v255_v8, %v254_v7  ;;  %v256_v10 = vld [vmem:[%s874_s6 + $0x70] sm:$0xff]  ;;  %v354_v15 = vld [vmem:[%s873_s5] ss:$0 sm:$0xff]  ;;  %s665_s5 = smov [#allocation7]  }
  0x33   :  { %548 = vmatprep.subr.bf16.mxu1 %v662_v3 }
  0x35   :  { %526 = vmatpush3.bf16.msra.mxu0 %v525_v30 }
  0x36   :  { %550 = vmatpush3.bf16.msra.mxu1 %v549_v31  ;;  %527 = vmatprep.subr.bf16.mxu0 %v662_v3 }
  0x37   :  { %551 = vmatprep.subr.bf16.mxu1 %v662_v3 }
  0x39   :  { %529 = vmatpush3.bf16.msra.mxu0 %v528_v36 }
  0x3a   :  { %553 = vmatpush3.bf16.msra.mxu1 %v552_v37  ;;  %530 = vmatprep.subr.bf16.mxu0 %v662_v3 }
  0x3b   :  { %554 = vmatprep.subr.bf16.mxu1 %v662_v3 }
  0x3d   :  { %532 = vmatpush3.bf16.msra.mxu0 %v531_v42 }
  0x3e   :  { %556 = vmatpush3.bf16.msra.mxu1 %v555_v43  ;;  %533 = vmatprep.subr.bf16.mxu0 %v662_v3 }
  0x3f   :  { %557 = vmatprep.subr.bf16.mxu1 %v662_v3 }
  0x41   :  { %535 = vmatpush3.bf16.msra.mxu0 %v534_v48 }
  0x42   :  { %559 = vmatpush3.bf16.msra.mxu1 %v558_v49  ;;  %560 = vmatprep.subr.bf16.mxu0 %v662_v3 }
  0x44   :  { %440 = vmatmul.mubr.f32.vlgmr.msra.gmra.mrb[0].mxu0 %v73_v52 }
  0x45   :  { %475 = vmatmul.mubr.f32.vlgmr.msra.gmra.mrb[0].mxu1 %v56_v54  ;;  %562 = vmatpush3.bf16.msra.mxu0 %v561_v53 }
  0x46   :  { %563 = vmatprep.subr.bf16.mxu0 %v662_v3  ;;  %509 = vmatprep.mubr.msk.f32.mxu0 %vm663_vm0, %v664_v11  ;;  %v257_v11 = vld [vmem:[%s874_s6 + $0x78] sm:$0xff]  ;;  %s343_s6 = sshll.u32 %s665_s5, 4  ;;  %s344_s6 = int_to_ptr.vmem [resolvable:$true] %s343_s6 }
  0x47   :  { %v582_v12 = vpack.c.bf16 %v257_v11, %v256_v10  ;;  %s630_s2 = scalar_lea.vmem %s344_s6, 64  ;;  %p635_p0 = scmp.lt.s32.totalorder %s344_s6, %s344_s6 }
  0x48   :  { %p631_p13 = scmp.ne.s32.totalorder %s344_s6, %s630_s2  ;;  %p636_p1 = scmp.lt.s32.totalorder %s630_s2, %s630_s2 }
  0x49   :  { %565 = vmatpush3.bf16.msra.mxu0 %v564_v57 }
  0x4a   :  { %566 = vmatprep.subr.bf16.mxu0 %v662_v3  ;;  %p637_p2 = por %p636_p1, %p635_p0 }
  0x4c   :  { %p638_p3 = pnand %p637_p2, %p631_p13 }
  0x4d   :  { %568 = vmatpush3.bf16.msra.mxu0 %v567_v60 }
  0x4e   :  { %569 = vmatprep.subr.bf16.mxu0 %v662_v3 }
  0x51   :  { %571 = vmatpush3.bf16.msra.mxu0 %v570_v63 }
  0x52   :  { %572 = vmatprep.subr.bf16.mxu0 %v662_v3 }
  0x55   :  { %574 = vmatpush3.bf16.msra.mxu0 %v573_v2 }
  0x56   :  { %575 = vmatprep.subr.bf16.mxu0 %v662_v3 }
  0x59   :  { %577 = vmatpush3.bf16.msra.mxu0 %v576_v6 }
  0x5a   :  { %578 = vmatprep.subr.bf16.mxu0 %v662_v3 }
  0x5d   :  { %580 = vmatpush3.bf16.msra.mxu0 %v579_v9 }
  0x5e   :  { %581 = vmatprep.subr.bf16.mxu0 %v662_v3 }
  0x61   :  { %583 = vmatpush3.bf16.msra.mxu0 %v582_v12 }
 0x117   :  { %v156_v13 = vpop.f32.mrb[0].mxu0 }
 0x118   :  { %v226_v14 = vpop.f32.mrb[0].mxu1  ;;  %v441_v16 = vpop.f32.mrb[1].mxu0 }
 0x119   :  { %v227_v17 = vadd.f32 %v226_v14, %v156_v13  ;;  %v476_v3 = vpop.f32.mrb[1].mxu1 }
 0x11b   :  { %v237_v19 = vadd.f32 %v354_v15, %v227_v17 }
 0x11d   :  { %v240_v20 = vmul.f32 %v239_v18, %v237_v19  ;;  %vm238_vm1 = vcmp.gt.f32.partialorder %v237_v19, 0.0 }
 0x11f   :  { %v241_v21 = vsel %vm238_vm1, %v237_v19, %v240_v20 }
 0x120   :  { %510 = vmatmul.mubr.f32.vlgmr.msra.gmra.mrb[2].mxu0 %v241_v21 }
 0x1f3   :  { %v325_v23 = vpop.f32.mrb[2].mxu0 }
 0x1f4   :  { %v326_v24 = vadd.f32 %v325_v23, %v258_v22  ;;  %v511_v25 = vpop.f32.mrb[3].mxu0 }
 0x1f6   :  { %v355_v26 = vmul.f32 -1.442695, %v326_v24 }
 0x1f8   :  { %592 = vpow2.f32 %v355_v26 }
 0x202   :  { %v593_v27 = vpop.eup %592 }
 0x203   :  { %v332_v28 = vadd.f32 1.0, %v593_v27 }
 0x205   :  { %594 = vrcp.f32 %v332_v28 }
 0x20f   :  { %v595_v29 = vpop.eup %594 }
 0x210   :  { %336 = vst.msk [vmem:[#allocation7] sm:$0xf] %vm335_vm2, %v595_v29 }
 0x211   :  { %641 = shalt.err (!%p638_p3)
}
 0x212   :  { %s642_s13 = scalar_lea.hbm %s875_s7, 64 }
 0x213   :  { %p643_p4 = scmp.ne.s32.totalorder %s875_s7, %s642_s13  ;;  %p646_p5 = scmp.lt.u32.totalorder %s642_s13, %s875_s7 }
 0x215   :  { %p648_p6 = pnand %p646_p5, %p643_p4 }
 0x217   :  { %651 = shalt.err (!%p648_p6)
}
 0x218   :  { %346 = dma.vmem_to_hbm [thread:$0]  %s344_s6, 64, %s875_s7, [#allocation4]  }
 0x219   :  { %656 = dma.done.wait [#allocation4], 64  }
 0x21a   :  { %657 = vsyncadd [#allocation4], 4294967232 }
 0x21b   :  { %350 = vsyncpa [#allocation3], 1 }
 0x21c   :  { %351 = vsyncpa [#allocation4], 1 }
 0x21d   :  { %352 = vsyncpa [#allocation5], 1 }

</bundles_post_ra>
